<compile_context>
chip_gen: v6e
topology: v6e:2x2x1
jax: 0.10.0
libtpu: 0.0.40
codegen_flags: <defaults>
</compile_context>

<pallas_src>
import functools
import math

import jax
import jax.numpy as jnp
from jax.experimental import pallas as pl
from jax.experimental.pallas import tpu as pltpu

STATE_DIM = 4    # CartPole-v1 observation_space.shape[0]
HIDDEN = 24
ACTION_DIM = 2   # CartPole-v1 action_space.n


def _policy_kernel(xT_ref, w1_ref, b1_ref, w2_ref, b2_ref, w3t_ref, b3_ref,
                   o_ref, *, matmul_dtype):
    """One batch tile, feature-major (batch lives in the 128-wide lane dim).

    xT_ref : (STATE_DIM, blk)     input states, transposed
    w1_ref : (HIDDEN, STATE_DIM)  fc1 weight, torch layout (out, in)
    b1_ref : (HIDDEN, 1)          fc1 bias (column -> broadcasts over lanes)
    w2_ref : (HIDDEN, HIDDEN)     fc2 weight, torch layout (out, in)
    b2_ref : (HIDDEN, 1)          fc2 bias
    w3t_ref: (HIDDEN, ACTION_DIM) fc3 weight transposed (in, out)
    b3_ref : (1, ACTION_DIM)      fc3 bias
    o_ref  : (ACTION_DIM, blk)    action probabilities, transposed
    """
    blk = o_ref.shape[1]

    # ---- fc1 (K = 4): VPU broadcast-FMA outer-product accumulation ----------
    # h1[j, b] = sum_k w1[j, k] * x[k, b]  -- too small for the MXU to pay off.
    h1 = w1_ref[:, 0:1] * xT_ref[0:1, :]                    # (HIDDEN, blk)
    for k in range(1, STATE_DIM):                           # static unroll
        h1 = h1 + w1_ref[:, k:k + 1] * xT_ref[k:k + 1, :]
    h1 = jnp.maximum(h1 + b1_ref[...], 0.0)

    # ---- fc2 (24 x 24): MXU, lane-dense N = blk, f32 accumulation ------------
    h2 = jnp.dot(w2_ref[...].astype(matmul_dtype), h1.astype(matmul_dtype),
                 preferred_element_type=jnp.float32)
    h2 = jnp.maximum(h2 + b2_ref[...], 0.0)                 # (HIDDEN, blk)

    # ---- fc3 + 2-class softmax (exact): only the logit difference is needed --
    #   softmax(l)[0] = sigmoid(l0 - l1),  softmax(l)[1] = sigmoid(l1 - l0)
    wd = w3t_ref[:, 0:1] - w3t_ref[:, 1:2]                  # (HIDDEN, 1)
    bd = b3_ref[:, 0:1] - b3_ref[:, 1:2]                    # (1, 1)
    d = jnp.sum(wd * h2, axis=0, keepdims=True) + bd        # (1, blk) = l0 - l1

    # Single full-tile store (no per-sublane masked stores): row 0 gets +d,
    # row 1 gets -d, then one sigmoid over the whole (2, blk) tile.
    row = jax.lax.broadcasted_iota(jnp.int32, (ACTION_DIM, blk), 0)
    z = jnp.where(row == 0, d, -d)                          # (ACTION_DIM, blk)
    o_ref[...] = 1.0 / (1.0 + jnp.exp(-z))


def policy_net_forward_fm(xT, params, *, tile_b=2048, matmul_dtype=jnp.bfloat16):
    """Feature-major fast path: xT (STATE_DIM, B) -> probsT (ACTION_DIM, B).

    No wrapper relayouts / padding: keep the surrounding pipeline feature-major
    to avoid extra HBM passes.  tile_b: sweep {1024, 2048, 4096}; use <= 2048 on
    v5e.  matmul_dtype=jnp.float32 gives bit-exact-ish results (tol ~1e-5).
    """
    w1, b1, w2, b2, w3, b3 = params                         # torch layout
    xT = xT.astype(jnp.float32)
    state_dim, B = xT.shape
    assert state_dim == STATE_DIM

    # Small batches: one full-array block (never pad a tiny batch to a big tile).
    # Large batches: lane-dense 128-multiple tiles; ragged last block is masked.
    tile = B if B <= tile_b else tile_b
    nb = pl.cdiv(B, tile)

    kernel = functools.partial(_policy_kernel, matmul_dtype=matmul_dtype)

    return pl.pallas_call(
        kernel,
        out_shape=jax.ShapeDtypeStruct((ACTION_DIM, B), jnp.float32),
        grid=(nb,),
        in_specs=[
            # x tile marches over the batch; weights/biases keep a constant
            # block index -> resident in VMEM, no re-DMA per grid step.
            pl.BlockSpec((STATE_DIM, tile), lambda i: (0, i)),
            pl.BlockSpec((HIDDEN, STATE_DIM), lambda i: (0, 0)),
            pl.BlockSpec((HIDDEN, 1), lambda i: (0, 0)),
            pl.BlockSpec((HIDDEN, HIDDEN), lambda i: (0, 0)),
            pl.BlockSpec((HIDDEN, 1), lambda i: (0, 0)),
            pl.BlockSpec((HIDDEN, ACTION_DIM), lambda i: (0, 0)),
            pl.BlockSpec((1, ACTION_DIM), lambda i: (0, 0)),
        ],
        out_specs=pl.BlockSpec((ACTION_DIM, tile), lambda i: (0, i)),
        compiler_params=pltpu.CompilerParams(
            # Independent batch tiles: shards across the two TensorCores on
            # v7x; harmless no-op on single-TC v5e/v6e.
            dimension_semantics=("parallel",),
        ),
    )(
        xT,
        w1, b1.reshape(HIDDEN, 1),
        w2, b2.reshape(HIDDEN, 1),
        w3.T, b3.reshape(1, ACTION_DIM),
    )


def policy_net_forward(x, params, **kwargs):
    """Torch-compatible path: x (B, STATE_DIM) -> probs (B, ACTION_DIM).

    Note: the two transposes here each cost an extra HBM pass over the data;
    a feature-major pipeline should call `policy_net_forward_fm` directly.
    """
    probsT = policy_net_forward_fm(jnp.asarray(x, jnp.float32).T, params, **kwargs)
    return probsT.T


def init_params(key):
    """Torch-layout params (W: (out, in), b: (out,)), U[-1/sqrt(fan_in), +]."""
    def linear(key, fan_in, fan_out):
        kw, kb = jax.random.split(key)
        bound = 1.0 / math.sqrt(fan_in)
        w = jax.random.uniform(kw, (fan_out, fan_in), jnp.float32, -bound, bound)
        b = jax.random.uniform(kb, (fan_out,), jnp.float32, -bound, bound)
        return w, b

    k1, k2, k3 = jax.random.split(key, 3)
    w1, b1 = linear(k1, STATE_DIM, HIDDEN)
    w2, b2 = linear(k2, HIDDEN, HIDDEN)
    w3, b3 = linear(k3, HIDDEN, ACTION_DIM)
    return (w1, b1, w2, b2, w3, b3)


def _reference_forward(x, params):
    """Pure-JAX reference (matches torch.nn semantics: y = x @ W.T + b)."""
    w1, b1, w2, b2, w3, b3 = params
    h1 = jnp.maximum(x @ w1.T + b1, 0.0)
    h2 = jnp.maximum(h1 @ w2.T + b2, 0.0)
    logits = h2 @ w3.T + b3
    return jax.nn.softmax(logits, axis=-1)


if __name__ == "__main__":
    key = jax.random.PRNGKey(0)
    kx, kp = jax.random.split(key)
    params = init_params(kp)

    # 1) Tiny per-step actor batch, exact math (f32 matmul): single small block.
    x_small = jax.random.normal(kx, (8, STATE_DIM), dtype=jnp.float32)
    probs = jax.block_until_ready(
        policy_net_forward(x_small, params, matmul_dtype=jnp.float32))
    ref = _reference_forward(x_small, params)
    assert probs.shape == (8, ACTION_DIM)
    assert jnp.allclose(probs, ref, atol=1e-5, rtol=1e-5)
    assert jnp.allclose(jnp.sum(probs, axis=-1), 1.0, atol=1e-5)

    # 2) Rollout-sized batch on the default bf16-MXU path (loosened tolerance).
    x_roll = jax.random.normal(jax.random.PRNGKey(1), (384, STATE_DIM),
                               dtype=jnp.float32)
    probs_roll = jax.block_until_ready(policy_net_forward(x_roll, params))
    ref_roll = _reference_forward(x_roll, params)
    assert probs_roll.shape == (384, ACTION_DIM)
    assert jnp.allclose(probs_roll, ref_roll, atol=2e-2, rtol=2e-2)
    assert jnp.allclose(jnp.sum(probs_roll, axis=-1), 1.0, atol=1e-4)

    # 3) Multi-tile grid with a ragged (masked) last block: B=200, tile=128.
    x_rag = jax.random.normal(jax.random.PRNGKey(2), (200, STATE_DIM),
                              dtype=jnp.float32)
    probs_rag = jax.block_until_ready(
        policy_net_forward(x_rag, params, tile_b=128, matmul_dtype=jnp.float32))
    ref_rag = _reference_forward(x_rag, params)
    assert probs_rag.shape == (200, ACTION_DIM)
    assert jnp.allclose(probs_rag, ref_rag, atol=1e-5, rtol=1e-5)

    # 4) Feature-major fast path (no wrapper relayouts at all).
    probs_fm = jax.block_until_ready(
        policy_net_forward_fm(x_roll.T, params, matmul_dtype=jnp.float32))
    assert probs_fm.shape == (ACTION_DIM, 384)
    assert jnp.allclose(probs_fm.T, ref_roll, atol=1e-5, rtol=1e-5)

    print("KERNEL_OK")
</pallas_src>

<mosaic_0001>
module attributes {stable_mosaic.version = 11 : i64} {
  func.func @_policy_kernel(%arg0: i32, %arg1: memref<4x8xf32, #tpu.memory_space<vmem>>, %arg2: memref<24x4xf32, #tpu.memory_space<vmem>>, %arg3: memref<24x1xf32, #tpu.memory_space<vmem>>, %arg4: memref<24x24xf32, #tpu.memory_space<vmem>>, %arg5: memref<24x1xf32, #tpu.memory_space<vmem>>, %arg6: memref<24x2xf32, #tpu.memory_space<vmem>>, %arg7: memref<1x2xf32, #tpu.memory_space<vmem>>, %arg8: memref<2x8xf32, #tpu.memory_space<vmem>>) attributes {dimension_semantics = [#tpu.dimension_semantics<parallel>], iteration_bounds = array<i64: 1>, scalar_prefetch = 0 : i64, scratch_operands = 0 : i64, tpu.core_type = #tpu.core_type<tc>, window_params = [{transform_indices = @transform_0, window_bounds = array<i64: 4, 8>}, {pipeline_mode = #tpu.pipeline_mode<synchronous>, transform_indices = @transform_1, window_bounds = array<i64: 24, 4>}, {pipeline_mode = #tpu.pipeline_mode<synchronous>, transform_indices = @transform_2, window_bounds = array<i64: 24, 1>}, {pipeline_mode = #tpu.pipeline_mode<synchronous>, transform_indices = @transform_3, window_bounds = array<i64: 24, 24>}, {pipeline_mode = #tpu.pipeline_mode<synchronous>, transform_indices = @transform_4, window_bounds = array<i64: 24, 1>}, {pipeline_mode = #tpu.pipeline_mode<synchronous>, transform_indices = @transform_5, window_bounds = array<i64: 24, 2>}, {pipeline_mode = #tpu.pipeline_mode<synchronous>, transform_indices = @transform_6, window_bounds = array<i64: 1, 2>}, {transform_indices = @transform_7, window_bounds = array<i64: 2, 8>}]} {
    %c0 = arith.constant 0 : index
    %c0_0 = arith.constant 0 : index
    %0 = vector.load %arg2[%c0, %c0_0] : memref<24x4xf32, #tpu.memory_space<vmem>>, vector<24x1xf32>
    %c0_1 = arith.constant 0 : index
    %c0_2 = arith.constant 0 : index
    %1 = vector.load %arg1[%c0_1, %c0_2] : memref<4x8xf32, #tpu.memory_space<vmem>>, vector<1x8xf32>
    %2 = vector.broadcast %0 : vector<24x1xf32> to vector<24x8xf32>
    %3 = vector.broadcast %1 : vector<1x8xf32> to vector<24x8xf32>
    %4 = arith.mulf %2, %3 : vector<24x8xf32>
    %c0_3 = arith.constant 0 : index
    %c1 = arith.constant 1 : index
    %5 = vector.load %arg2[%c0_3, %c1] : memref<24x4xf32, #tpu.memory_space<vmem>>, vector<24x1xf32>
    %c1_4 = arith.constant 1 : index
    %c0_5 = arith.constant 0 : index
    %6 = vector.load %arg1[%c1_4, %c0_5] : memref<4x8xf32, #tpu.memory_space<vmem>>, vector<1x8xf32>
    %7 = vector.broadcast %5 : vector<24x1xf32> to vector<24x8xf32>
    %8 = vector.broadcast %6 : vector<1x8xf32> to vector<24x8xf32>
    %9 = arith.mulf %7, %8 : vector<24x8xf32>
    %10 = arith.addf %4, %9 : vector<24x8xf32>
    %c0_6 = arith.constant 0 : index
    %c2 = arith.constant 2 : index
    %11 = vector.load %arg2[%c0_6, %c2] : memref<24x4xf32, #tpu.memory_space<vmem>>, vector<24x1xf32>
    %c2_7 = arith.constant 2 : index
    %c0_8 = arith.constant 0 : index
    %12 = vector.load %arg1[%c2_7, %c0_8] : memref<4x8xf32, #tpu.memory_space<vmem>>, vector<1x8xf32>
    %13 = vector.broadcast %11 : vector<24x1xf32> to vector<24x8xf32>
    %14 = vector.broadcast %12 : vector<1x8xf32> to vector<24x8xf32>
    %15 = arith.mulf %13, %14 : vector<24x8xf32>
    %16 = arith.addf %10, %15 : vector<24x8xf32>
    %c0_9 = arith.constant 0 : index
    %c3 = arith.constant 3 : index
    %17 = vector.load %arg2[%c0_9, %c3] : memref<24x4xf32, #tpu.memory_space<vmem>>, vector<24x1xf32>
    %c3_10 = arith.constant 3 : index
    %c0_11 = arith.constant 0 : index
    %18 = vector.load %arg1[%c3_10, %c0_11] : memref<4x8xf32, #tpu.memory_space<vmem>>, vector<1x8xf32>
    %19 = vector.broadcast %17 : vector<24x1xf32> to vector<24x8xf32>
    %20 = vector.broadcast %18 : vector<1x8xf32> to vector<24x8xf32>
    %21 = arith.mulf %19, %20 : vector<24x8xf32>
    %22 = arith.addf %16, %21 : vector<24x8xf32>
    %c0_12 = arith.constant 0 : index
    %c0_13 = arith.constant 0 : index
    %23 = vector.load %arg3[%c0_12, %c0_13] : memref<24x1xf32, #tpu.memory_space<vmem>>, vector<24x1xf32>
    %24 = vector.broadcast %23 : vector<24x1xf32> to vector<24x8xf32>
    %25 = arith.addf %22, %24 : vector<24x8xf32>
    %cst = arith.constant 0.000000e+00 : f32
    %26 = vector.broadcast %cst : f32 to vector<24x8xf32>
    %27 = arith.maximumf %25, %26 : vector<24x8xf32>
    %c0_14 = arith.constant 0 : index
    %c0_15 = arith.constant 0 : index
    %28 = vector.load %arg4[%c0_14, %c0_15] : memref<24x24xf32, #tpu.memory_space<vmem>>, vector<24x24xf32>
    %cst_16 = arith.constant dense<0.000000e+00> : vector<24x8xf32>
    %29 = tpu.matmul %28, %27, %cst_16 {dimension_numbers = #tpu.dot_dimension_numbers<[1], [0], [0], [1], [0, 0, 1, 1], [], []>} : vector<24x24xf32>, vector<24x8xf32>, vector<24x8xf32> -> vector<24x8xf32>
    %c0_17 = arith.constant 0 : index
    %c0_18 = arith.constant 0 : index
    %30 = vector.load %arg5[%c0_17, %c0_18] : memref<24x1xf32, #tpu.memory_space<vmem>>, vector<24x1xf32>
    %31 = vector.broadcast %30 : vector<24x1xf32> to vector<24x8xf32>
    %32 = arith.addf %29, %31 : vector<24x8xf32>
    %cst_19 = arith.constant 0.000000e+00 : f32
    %33 = vector.broadcast %cst_19 : f32 to vector<24x8xf32>
    %34 = arith.maximumf %32, %33 : vector<24x8xf32>
    %c0_20 = arith.constant 0 : index
    %c0_21 = arith.constant 0 : index
    %35 = vector.load %arg6[%c0_20, %c0_21] : memref<24x2xf32, #tpu.memory_space<vmem>>, vector<24x1xf32>
    %c0_22 = arith.constant 0 : index
    %c1_23 = arith.constant 1 : index
    %36 = vector.load %arg6[%c0_22, %c1_23] : memref<24x2xf32, #tpu.memory_space<vmem>>, vector<24x1xf32>
    %37 = arith.subf %35, %36 : vector<24x1xf32>
    %c0_24 = arith.constant 0 : index
    %c0_25 = arith.constant 0 : index
    %38 = vector.load %arg7[%c0_24, %c0_25] : memref<1x2xf32, #tpu.memory_space<vmem>>, vector<1x1xf32>
    %c0_26 = arith.constant 0 : index
    %c1_27 = arith.constant 1 : index
    %39 = vector.load %arg7[%c0_26, %c1_27] : memref<1x2xf32, #tpu.memory_space<vmem>>, vector<1x1xf32>
    %40 = arith.subf %38, %39 : vector<1x1xf32>
    %41 = vector.broadcast %37 : vector<24x1xf32> to vector<24x8xf32>
    %42 = arith.mulf %41, %34 : vector<24x8xf32>
    %cst_28 = arith.constant dense<0.000000e+00> : vector<8xf32>
    %43 = vector.multi_reduction <add>, %42, %cst_28 [0] : vector<24x8xf32> to vector<8xf32>
    %44 = vector.shape_cast %43 : vector<8xf32> to vector<1x8xf32>
    %45 = vector.broadcast %40 : vector<1x1xf32> to vector<1x8xf32>
    %46 = arith.addf %44, %45 : vector<1x8xf32>
    %47 = tpu.iota {dimensions = array<i32: 0>} : vector<2x8xi32>
    %c0_i32 = arith.constant 0 : i32
    %48 = vector.broadcast %c0_i32 : i32 to vector<2x8xi32>
    %49 = arith.cmpi eq, %47, %48 : vector<2x8xi32>
    %cst_29 = arith.constant 0.000000e+00 : f32
    %50 = vector.broadcast %cst_29 : f32 to vector<1x8xf32>
    %51 = arith.subf %50, %46 : vector<1x8xf32>
    %52 = vector.shape_cast %46 : vector<1x8xf32> to vector<1x8xf32>
    %53 = vector.broadcast %52 : vector<1x8xf32> to vector<2x8xf32>
    %54 = vector.shape_cast %51 : vector<1x8xf32> to vector<1x8xf32>
    %55 = vector.broadcast %54 : vector<1x8xf32> to vector<2x8xf32>
    %56 = arith.select %49, %53, %55 : vector<2x8xi1>, vector<2x8xf32>
    %cst_30 = arith.constant 0.000000e+00 : f32
    %57 = vector.broadcast %cst_30 : f32 to vector<2x8xf32>
    %58 = arith.subf %57, %56 : vector<2x8xf32>
    %59 = math.exp %58 : vector<2x8xf32>
    %cst_31 = arith.constant 1.000000e+00 : f32
    %60 = vector.broadcast %cst_31 : f32 to vector<2x8xf32>
    %61 = arith.addf %60, %59 : vector<2x8xf32>
    %cst_32 = arith.constant 1.000000e+00 : f32
    %62 = vector.broadcast %cst_32 : f32 to vector<2x8xf32>
    %63 = arith.divf %62, %61 : vector<2x8xf32>
    %c0_33 = arith.constant 0 : index
    %c0_34 = arith.constant 0 : index
    %64 = vector.load %arg8[%c0_33, %c0_34] : memref<2x8xf32, #tpu.memory_space<vmem>>, vector<2x8xf32>
    tpu.vector_store %arg8[%c0_33, %c0_34], %63 {strides = array<i32>} : memref<2x8xf32, #tpu.memory_space<vmem>>, vector<2x8xf32>,
    return
  }
  func.func @transform_0(%arg0: i32) -> (i32, i32) {
    %c0_i32 = arith.constant 0 : i32
    %c0_i32_0 = arith.constant 0 : i32
    return %c0_i32, %arg0 : i32, i32
  }
  func.func @transform_1(%arg0: i32) -> (i32, i32) {
    %c0_i32 = arith.constant 0 : i32
    %c0_i32_0 = arith.constant 0 : i32
    %c0_i32_1 = arith.constant 0 : i32
    return %c0_i32, %c0_i32_0 : i32, i32
  }
  func.func @transform_2(%arg0: i32) -> (i32, i32) {
    %c0_i32 = arith.constant 0 : i32
    %c0_i32_0 = arith.constant 0 : i32
    %c0_i32_1 = arith.constant 0 : i32
    return %c0_i32, %c0_i32_0 : i32, i32
  }
  func.func @transform_3(%arg0: i32) -> (i32, i32) {
    %c0_i32 = arith.constant 0 : i32
    %c0_i32_0 = arith.constant 0 : i32
    %c0_i32_1 = arith.constant 0 : i32
    return %c0_i32, %c0_i32_0 : i32, i32
  }
  func.func @transform_4(%arg0: i32) -> (i32, i32) {
    %c0_i32 = arith.constant 0 : i32
    %c0_i32_0 = arith.constant 0 : i32
    %c0_i32_1 = arith.constant 0 : i32
    return %c0_i32, %c0_i32_0 : i32, i32
  }
  func.func @transform_5(%arg0: i32) -> (i32, i32) {
    %c0_i32 = arith.constant 0 : i32
    %c0_i32_0 = arith.constant 0 : i32
    %c0_i32_1 = arith.constant 0 : i32
    return %c0_i32, %c0_i32_0 : i32, i32
  }
  func.func @transform_6(%arg0: i32) -> (i32, i32) {
    %c0_i32 = arith.constant 0 : i32
    %c0_i32_0 = arith.constant 0 : i32
    %c0_i32_1 = arith.constant 0 : i32
    return %c0_i32, %c0_i32_0 : i32, i32
  }
  func.func @transform_7(%arg0: i32) -> (i32, i32) {
    %c0_i32 = arith.constant 0 : i32
    %c0_i32_0 = arith.constant 0 : i32
    return %c0_i32, %arg0 : i32, i32
  }
}

</mosaic_0001>

<bundles_post_ra>
// kernel: tpu_custom_call.1
= control target key start
LH: loop header
LB: loop body
LE: loop exit
PB: predicated region body
PF: predicated region fallthrough
CT: control target
= control target key end

     0   :  { %v430_v2 = vmov 1   ;;  %v431_v3 = vmov 0   ;;  %s565_s0 = inlined_call_operand.vmem [shape: f32[4,8], index: 0, kind: input, shape index: {}]   ;;  %s566_s1 = inlined_call_operand.vmem [shape: f32[24,4], index: 1, kind: input, shape index: {}]   ;;  %s567_s2 = inlined_call_operand.vmem [shape: f32[24,1], index: 2, kind: input, shape index: {}]   ;;  %s568_s3 = inlined_call_operand.vmem [shape: f32[24,24], index: 3, kind: input, shape index: {}]   ;;  %s569_s4 = inlined_call_operand.vmem [shape: f32[24,1], index: 4, kind: input, shape index: {}]   ;;  %s570_s5 = inlined_call_operand.vmem [shape: f32[24,2], index: 5, kind: input, shape index: {}]   ;;  %s571_s6 = inlined_call_operand.vmem [shape: f32[1,2], index: 6, kind: input, shape index: {}]   ;;  %s572_s7 = inlined_call_operand.hbm [shape: f32[2,8], index: 7, kind: output, shape index: {}]  }
   0x1   :  { %v29_v0 = vld [vmem:[%s566_s1 + $0x10] sm:$0xff]  ;;  %v28_v1 = vld [vmem:[%s566_s1 + $0x8] sm:$0xff]  ;;  %393 = vset.pattern.permute.xlu0 %v430_v2  ;;  %395 = vset.pattern.permute.xlu1 %v431_v3 }
   0x2   :  { %63 = vperm.xlu0 %393, %v29_v0   ;;  %38 = vperm.xlu1 %395, %v28_v1  }
   0x3   :  { %12 = vsyncpa [#allocation3], 0  ;;  %v27_v4 = vld [vmem:[%s566_s1] sm:$0xff]  ;;  %v432_v5 = vmov 2   ;;  %v433_v6 = vmov 3   ;;  %v123_v7 = vld [vmem:[%s567_s2 + $0x8] sm:$0xff] }
   0x4   :  { %v261_v8 = vld [vmem:[%s570_s5 + $0x8] sm:$0xff]  ;;  %s434_s10 = smov 127   ;;  %v496_v9 = vld [vmem:[%s571_s6] sm:$0x1]  ;;  %v124_v10 = vld [vmem:[%s567_s2 + $0x10] sm:$0xff]  ;;  %v435_v12 = vmov 0.0  }
   0x5   :  { %v150_v11 = vld [vmem:[%s569_s4 + $0x8] sm:$0xff]  ;;  %364 = vmatprep.subr.mxu0 %v435_v12  ;;  %379 = vmatprep.subr.mxu1 %v435_v12  ;;  %v122_v13 = vld [vmem:[%s567_s2] sm:$0xff]  ;;  %vm436_vm0 = vmmov 0   ;;  %v523_v15 = vld [vmem:[%s570_s5 + $0x10] sm:$0xff]  ;;  %vm167_vm1 = vcmask 195584   ;;  %vm302_vm2 = vcmask 64512  }
   0x6   :  { %394 = vset.pattern.permute.xlu0 %v431_v3  ;;  %396 = vset.pattern.permute.xlu1 %v430_v2  ;;  %v515_v14 = vld [vmem:[%s570_s5] sm:$0xff]  ;;  %v151_v17 = vld [vmem:[%s569_s4 + $0x10] sm:$0xff]  ;;  %vm335_vm4 = vcmask 58368  }
   0x7   :  { %43 = vperm.xlu0 %394, %v29_v0   ;;  %59 = vperm.xlu1 %396, %v28_v1   ;;  %v149_v16 = vld [vmem:[%s569_s4] sm:$0xff] }
   0x8   :  { %370 = vmatprep.mubr.msk.f32.mxu0 %vm436_vm0, %v435_v12  ;;  %373 = vmatprep.mubr.msk.f32.mxu1 %vm436_vm0, %v435_v12  ;;  %v352_v28 = vld [vmem:[%s565_s0 + $0x1] ss:$0 sm:$0xff]  ;;  %v351_v29 = vld [vmem:[%s565_s0] ss:$0 sm:$0xff]  ;;  %v353_v34 = vld [vmem:[%s565_s0 + $0x2] ss:$0 sm:$0xff] }
   0x9   :  { %v354_v37 = vld [vmem:[%s565_s0 + $0x3] ss:$0 sm:$0xff] }
   0xb   :  { %397 = vset.pattern.permute.xlu1 %v432_v5  ;;  %33 = vperm.xlu0 %394, %v27_v4  }
   0xc   :  { %86 = vperm.xlu1 %397, %v29_v0  }
   0xf   :  { %400 = vset.pattern.permute.xlu0 %v433_v6 }
  0x10   :  { %398 = vset.pattern.permute.xlu1 %v430_v2  ;;  %109 = vperm.xlu0 %400, %v29_v0  }
  0x11   :  { %55 = vperm.xlu1 %398, %v27_v4  }
  0x14   :  { %101 = vperm.xlu0 %400, %v27_v4  }
  0x15   :  { %399 = vset.pattern.permute.xlu1 %v432_v5  ;;  %v147_v5 = vld [vmem:[%s568_s3 + $0x8] sm:$0xff] }
  0x16   :  { %82 = vperm.xlu1 %399, %v28_v1  }
  0x18   :  { %403 = vset.pattern.permute.xlu0 %v431_v3 }
  0x19   :  { %132 = vperm.xlu0 %403, %v123_v7  }
  0x1a   :  { %78 = vperm.xlu1 %399, %v27_v4   ;;  %v146_v4 = vld [vmem:[%s568_s3] sm:$0xff] }
  0x1d   :  { %268 = vrot.lane.b32.xlu0 %v261_v8, %s434_s10 }
  0x1e   :  { %401 = vset.pattern.permute.xlu1 %v433_v6 }
  0x1f   :  { %105 = vperm.xlu1 %401, %v28_v1  }
  0x21   :  { %280 = vrot.lane.b32.xlu0 %v496_v9, %s434_s10 }
  0x23   :  { %402 = vset.pattern.permute.xlu1 %v431_v3 }
  0x24   :  { %137 = vperm.xlu1 %402, %v124_v10  }
  0x25   :  { %159 = vperm.xlu0 %403, %v150_v11  }
  0x28   :  { %127 = vperm.xlu1 %402, %v122_v13  }
  0x2c   :  { %266 = vrot.lane.b32.xlu1 %v515_v14, %s434_s10 }
  0x30   :  { %270 = vrot.lane.b32.xlu1 %v523_v15, %s434_s10 }
  0x34   :  { %154 = vperm.xlu1 %402, %v149_v16  }
  0x38   :  { %164 = vperm.xlu1 %402, %v151_v17  }
  0x7d   :  { %v39_v18 = vpop.permute.xlu1 %38  ;;  %v64_v19 = vpop.permute.xlu0 %63 }
  0x7e   :  { %v72_v30 = vmul.f32 %v352_v28, %v64_v19  ;;  %v51_v36 = vmul.f32 %v351_v29, %v39_v18 }
  0x82   :  { %v60_v20 = vpop.permute.xlu1 %59  ;;  %v44_v21 = vpop.permute.xlu0 %43 }
  0x83   :  { %v52_v31 = vmul.f32 %v351_v29, %v44_v21  ;;  %v71_v33 = vmul.f32 %v352_v28, %v60_v20 }
  0x85   :  { %v75_v39 = vadd.f32 %v72_v30, %v52_v31  ;;  %v74_v44 = vadd.f32 %v71_v33, %v51_v36  ;;  %v319_v36 = vlaneseq }
  0x86   :  { %v34_v22 = vpop.permute.xlu0 %33 }
  0x87   :  { %v87_v23 = vpop.permute.xlu1 %86  ;;  %v50_v41 = vmul.f32 %v351_v29, %v34_v22 }
  0x88   :  { %v95_v40 = vmul.f32 %v353_v34, %v87_v23 }
  0x8a   :  { %v98_v51 = vadd.f32 %v95_v40, %v75_v39  ;;  %v320_v39 = vshrl.u32 %v319_v36, 7 }
  0x8b   :  { %v110_v24 = vpop.permute.xlu0 %109 }
  0x8c   :  { %v56_v25 = vpop.permute.xlu1 %55  ;;  %v118_v46 = vmul.f32 %v354_v37, %v110_v24  ;;  %vm326_vm3 = vcmp.eq.s32.totalorder %v320_v39, 0 }
  0x8d   :  { %v70_v42 = vmul.f32 %v352_v28, %v56_v25 }
  0x8e   :  { %v121_v58 = vadd.f32 %v118_v46, %v98_v51 }
  0x8f   :  { %v102_v26 = vpop.permute.xlu0 %101  ;;  %v73_v52 = vadd.f32 %v70_v42, %v50_v41  ;;  %v321_v42 = vsub.s32 0, %v320_v39 }
  0x90   :  { %v116_v56 = vmul.f32 %v354_v37, %v102_v26 }
  0x91   :  { %v83_v27 = vpop.permute.xlu1 %82 }
  0x92   :  { %v94_v38 = vmul.f32 %v353_v34, %v83_v27 }
  0x94   :  { %v133_v32 = vpop.permute.xlu0 %132  ;;  %v97_v49 = vadd.f32 %v94_v38, %v74_v44 }
  0x95   :  { %v79_v35 = vpop.permute.xlu1 %78 }
  0x96   :  { %v93_v47 = vmul.f32 %v353_v34, %v79_v35 }
  0x98   :  { %v269_v43 = vpop.permute.xlu0 %268  ;;  %v96_v57 = vadd.f32 %v93_v47, %v73_v52 }
  0x99   :  { %v276_v45 = vsub.f32 %v261_v8, %v269_v43  ;;  %v148_v8 = vld [vmem:[%s568_s3 + $0x10] sm:$0xff]  ;;  %s437_s3 = smov [#allocation2]  }
  0x9a   :  { %v106_v48 = vpop.permute.xlu1 %105  ;;  %v119_v63 = vadd.f32 %v116_v56, %v96_v57  ;;  %s343_s12 = sshll.u32 %s437_s3, 4  ;;  %s344_s12 = int_to_ptr.vmem [resolvable:$true] %s343_s12 }
  0x9b   :  { %v117_v50 = vmul.f32 %v354_v37, %v106_v48  ;;  %291 = vperm.xlu1 %402, %v276_v45   ;;  %s408_s13 = scalar_lea.vmem %s344_s12, 32  ;;  %p413_p1 = scmp.lt.s32.totalorder %s344_s12, %s344_s12 }
  0x9c   :  { %v281_v53 = vpop.permute.xlu0 %280  ;;  %p409_p0 = scmp.ne.s32.totalorder %s344_s12, %s408_s13  ;;  %p414_p2 = scmp.lt.s32.totalorder %s408_s13, %s408_s13 }
  0x9d   :  { %v120_v54 = vadd.f32 %v117_v50, %v97_v49  ;;  %v283_v55 = vsub.f32 %v496_v9, %v281_v53 }
  0x9e   :  { %p415_p3 = por %p414_p2, %p413_p1 }
  0x9f   :  { %v138_v59 = vpop.permute.xlu1 %137  ;;  %316 = vperm.xlu1 %402, %v283_v55   ;;  %v141_v61 = vadd.f32 %v133_v32, %v120_v54 }
  0xa0   :  { %v142_v60 = vadd.f32 %v138_v59, %v121_v58  ;;  %v160_v13 = vpop.permute.xlu0 %159  ;;  %p416_p4 = pnand %p415_p3, %p409_p0 }
  0xa1   :  { %v144_v2 = vmax.f32 %v141_v61, 0.0 }
  0xa2   :  { %v145_v62 = vmax.f32 %v142_v60, 0.0 }
  0xa3   :  { %v128_v0 = vpop.permute.xlu1 %127 }
  0xa4   :  { %v140_v1 = vadd.f32 %v128_v0, %v119_v63  ;;  %365 = vmatpush3.msra.mxu0 %v145_v62  ;;  %382 = vmatpush3.msra.mxu1 %v145_v62 }
  0xa5   :  { %366 = vmatprep.subr.mxu0 %v435_v12  ;;  %380 = vmatprep.subr.mxu1 %v435_v12 }
  0xa6   :  { %v143_v3 = vmax.f32 %v140_v1, 0.0  ;;  %367 = vmatpush3.msra.mxu0 %v144_v2  ;;  %383 = vmatpush3.msra.mxu1 %v144_v2 }
  0xa7   :  { %v267_v6 = vpop.permute.xlu1 %266  ;;  %368 = vmatprep.subr.mxu0 %v435_v12  ;;  %381 = vmatprep.subr.mxu1 %v435_v12 }
  0xa8   :  { %v275_v7 = vsub.f32 %v515_v14, %v267_v6  ;;  %369 = vmatpush3.msra.mxu0 %v143_v3  ;;  %384 = vmatpush3.msra.mxu1 %v143_v3 }
  0xa9   :  { %371 = vmatmul.mubr.msk.f32.vlgmr.msra.gmra.mxu0 %vm167_vm1, %v146_v4  ;;  %374 = vmatmul.mubr.msk.f32.vlgmr.msra.gmra.mxu1 %vm167_vm1, %v147_v5 }
  0xaa   :  { %286 = vperm.xlu0 %403, %v275_v7   ;;  %376 = vmatprep.mubr.msk.f32.mxu1 %vm436_vm0, %v435_v12 }
  0xab   :  { %v271_v9 = vpop.permute.xlu1 %270 }
  0xac   :  { %v277_v10 = vsub.f32 %v523_v15, %v271_v9 }
  0xad   :  { %377 = vmatmul.mubr.msk.f32.gmra.mxu1 %vm167_vm1, %v148_v8 }
  0xae   :  { %296 = vperm.xlu0 %403, %v277_v10  }
  0xaf   :  { %v155_v11 = vpop.permute.xlu1 %154 }
  0xb3   :  { %v165_v14 = vpop.permute.xlu1 %164 }
 0x116   :  { %v292_v24 = vpop.permute.xlu1 %291 }
 0x11a   :  { %v317_v44 = vpop.permute.xlu1 %316 }
 0x11b   :  { %v322_v46 = vrot.slane %v317_v44, %v321_v42 }
 0x125   :  { %v287_v18 = vpop.permute.xlu0 %286 }
 0x129   :  { %v297_v32 = vpop.permute.xlu0 %296 }
 0x169   :  { %v243_v16 = vpop.f32.mrf.mxu0  ;;  %v248_v17 = vpop.f32.mrf.mxu1 }
 0x16a   :  { %v244_v19 = vadd.f32 %v243_v16, %v155_v11  ;;  %v249_v20 = vadd.f32 %v248_v17, %v160_v13 }
 0x16b   :  { %v372_v21 = vpop.f32.mrf.mxu0  ;;  %v375_v22 = vpop.f32.mrf.mxu1 }
 0x16c   :  { %v257_v12 = vmax.f32 %v244_v19, 0.0  ;;  %v258_v23 = vmax.f32 %v249_v20, 0.0 }
 0x16d   :  { %v253_v25 = vpop.f32.mrf.mxu1 }
 0x16e   :  { %v299_v26 = vmul.f32 %v287_v18, %v257_v12  ;;  %v300_v27 = vmul.f32 %v292_v24, %v258_v23  ;;  %v254_v15 = vadd.f32 %v253_v25, %v165_v14 }
 0x16f   :  { %v378_v28 = vpop.f32.mrf.mxu1 }
 0x170   :  { %v303_v29 = vsel %vm302_vm2, %v299_v26, 0.0  ;;  %v304_v30 = vsel %vm302_vm2, %v300_v27, 0.0  ;;  %v259_v31 = vmax.f32 %v254_v15, 0.0 }
 0x171   :  { %v305_v34 = vadd.f32 %v304_v30, %v303_v29 }
 0x172   :  { %v301_v33 = vmul.f32 %v297_v32, %v259_v31 }
 0x174   :  { %v306_v35 = vsel %vm302_vm2, %v301_v33, 0.0 }
 0x175   :  { %v307_v37 = vadd.f32 %v306_v35, %v305_v34 }
 0x177   :  { %v308_v38 = vrot.slane %v307_v37, 4 }
 0x179   :  { %v309_v40 = vadd.f32 %v308_v38, %v307_v37 }
 0x17b   :  { %v310_v41 = vrot.slane %v309_v40, 2 }
 0x17d   :  { %v311_v43 = vadd.f32 %v310_v41, %v309_v40 }
 0x17f   :  { %v312_v45 = vrot.slane %v311_v43, 1 }
 0x181   :  { %v313_v47 = vadd.f32 %v312_v45, %v311_v43 }
 0x183   :  { %v323_v48 = vadd.f32 %v322_v46, %v313_v47 }
 0x185   :  { %v327_v49 = vsub.f32 0.0, %v323_v48 }
 0x187   :  { %v328_v50 = vsel %vm326_vm3, %v323_v48, %v327_v49 }
 0x188   :  { %v329_v51 = vsub.f32 0.0, %v328_v50 }
 0x18a   :  { %v330_v52 = vmul.f32 1.442695, %v329_v51 }
 0x18c   :  { %404 = vpow2.f32 %v330_v52 }
 0x199   :  { %v405_v53 = vpop.eup %404 }
 0x19a   :  { %v332_v54 = vadd.f32 1.0, %v405_v53 }
 0x19c   :  { %406 = vrcp.f32 %v332_v54 }
 0x1a9   :  { %v407_v55 = vpop.eup %406 }
 0x1aa   :  { %336 = vst.msk [vmem:[#allocation2] sm:$0x3] %vm335_vm4, %v407_v55 }
 0x1ab   :  { %419 = shalt.err (!%p416_p4)
}
 0x1ac   :  { %346 = dma.vmem_to_hbm [thread:$0]  %s344_s12, 32, %s572_s7, [#allocation3]  }
 0x1ad   :  { %428 = dma.done.wait [#allocation3], 32  }
 0x1ae   :  { %429 = vsyncadd [#allocation3], 4294967264 }
 0x1af   :  { %350 = vsyncpa [#allocation3], 1 }

</bundles_post_ra>
